<compile_context>
chip_gen: v5e
topology: v5e:2x2
jax: 0.10.0
libtpu: 0.0.40
codegen_flags: <defaults>
</compile_context>

<pallas_src>
import functools

import jax
import jax.numpy as jnp
from jax import lax
from jax.experimental import pallas as pl
from jax.experimental.pallas import tpu as pltpu

C_IN = 3
C_OUT = 16
KH = KW = 3
BN_EPS = 1e-5


def _cbr_kernel(x_ref, w_ref, b_ref, o_ref, *, nb, width, hw):
    # x_ref: (nb, C_IN, hw)           flat images, channels on sublanes
    # w_ref: (KH*KW*C_IN, C_OUT, hw)  lane-replicated folded weights
    # b_ref: (C_OUT, hw)              lane-replicated folded bias
    # o_ref: (nb, C_OUT, hw)          lane-dense output slabs (cropped in wrapper)
    bias = b_ref[...]                                   # (C_OUT, hw), 4 vregs

    # nb is a small static int; a Python loop is equivalent to
    # lax.fori_loop(..., unroll=True) at trace time.
    for img in range(nb):
        x_img = x_ref[img]                              # (C_IN, hw)
        partials = []
        for ci in range(C_IN):
            # One sublane broadcast per input channel (hoisted out of the tap loop).
            xc = jnp.broadcast_to(x_img[ci:ci + 1, :], (C_OUT, hw))
            # One accumulator chain per input channel; bias is chain-0's init.
            acc = bias if ci == 0 else None
            for kh in range(KH):
                for kw in range(KW):
                    s = kh * width + kw
                    k = (ci * KH + kh) * KW + kw
                    # out[p] needs in[p + s]: jnp.roll-style rotate by hw - s.
                    xs = xc if s == 0 else pltpu.roll(xc, shift=hw - s, axis=1)
                    term = w_ref[k] * xs                # lane-replicated weight: pure VALU
                    acc = term if acc is None else acc + term
            partials.append(acc)
        out = partials[0]
        for part in partials[1:]:
            out = out + part
        o_ref[img] = jnp.maximum(out, 0.0).astype(o_ref.dtype)


def conv_bn_relu(x_nchw, w_table, b_table):
    """x_nchw: (N, 3, H, W) f32 -> (N, 16, H-2, W-2) f32 (NCHW in, NCHW out)."""
    n, cin, h, w = x_nchw.shape
    assert cin == C_IN
    ho, wo = h - (KH - 1), w - (KW - 1)
    hw = h * w
    assert w_table.shape == (KH * KW * C_IN, C_OUT, hw)
    assert b_table.shape == (C_OUT, hw)

    # Roll-wraparound safety: wrapped lanes land at p >= hw - max_shift, every
    # valid output has p <= (ho-1)*w + (wo-1) = hw - max_shift - 1.
    max_shift = (KH - 1) * w + (KW - 1)
    assert (ho - 1) * w + (wo - 1) < hw - max_shift

    # Keep >= 2 grid steps when possible so v7x's two TensorCores both get work;
    # nb > 1 per step amortizes per-step overhead on single-TC v5e/v6e.
    grid_steps = 2 if n >= 2 else 1
    nb = pl.cdiv(n, grid_steps)
    n_pad = grid_steps * nb

    x_flat = x_nchw.reshape(n, C_IN, hw)        # NCHW -> (N, C, H*W): pure bitcast
    if n_pad != n:
        x_flat = jnp.pad(x_flat, ((0, n_pad - n), (0, 0), (0, 0)))

    kernel = functools.partial(_cbr_kernel, nb=nb, width=w, hw=hw)
    out_flat = pl.pallas_call(
        kernel,
        out_shape=jax.ShapeDtypeStruct((n_pad, C_OUT, hw), jnp.float32),
        grid_spec=pltpu.PrefetchScalarGridSpec(
            num_scalar_prefetch=0,
            grid=(grid_steps,),
            in_specs=[
                pl.BlockSpec((nb, C_IN, hw), lambda i: (i, 0, 0)),
                pl.BlockSpec((KH * KW * C_IN, C_OUT, hw), lambda i: (0, 0, 0)),
                pl.BlockSpec((C_OUT, hw), lambda i: (0, 0)),
            ],
            out_specs=pl.BlockSpec((nb, C_OUT, hw), lambda i: (i, 0, 0)),
        ),
        compiler_params=pltpu.CompilerParams(
            dimension_semantics=("parallel",)),
    )(x_flat, w_table, b_table)

    # (N, C_OUT, H*W) -> (N, C_OUT, H, W) is a bitcast; crop the VALID window.
    # NOTE: the strided crop is a separate (output-sized) XLA copy; skip it if a
    # downstream consumer can accept the padded (H, W) slab.
    return out_flat.reshape(n_pad, C_OUT, h, w)[:n, :, :ho, :wo]


def make_params(key):
    """Raw parameters matching nn.Conv2d(3,16,3) + nn.BatchNorm2d(16) (eval mode)."""
    ks = jax.random.split(key, 6)
    w_oihw = jax.random.normal(ks[0], (C_OUT, C_IN, KH, KW), jnp.float32) * 0.1
    b_conv = jax.random.normal(ks[1], (C_OUT,), jnp.float32) * 0.1
    gamma = 1.0 + 0.1 * jax.random.normal(ks[2], (C_OUT,), jnp.float32)
    beta = 0.1 * jax.random.normal(ks[3], (C_OUT,), jnp.float32)
    running_mean = 0.1 * jax.random.normal(ks[4], (C_OUT,), jnp.float32)
    running_var = jax.random.uniform(ks[5], (C_OUT,), jnp.float32,
                                     minval=0.5, maxval=1.5)
    return w_oihw, b_conv, gamma, beta, running_mean, running_var


def fold_bn(w_oihw, b_conv, gamma, beta, running_mean, running_var, *, hw):
    """Fold eval-mode BatchNorm into the conv and emit lane-replicated tables."""
    # TODO(synk): train-mode BatchNorm (batch statistics + running-stat update)
    # is not implemented; this is the inference forward pass.
    scale = gamma * lax.rsqrt(running_var + BN_EPS)            # (C_OUT,)
    w_f = w_oihw * scale[:, None, None, None]                  # (O, I, KH, KW)
    b_f = (b_conv - running_mean) * scale + beta               # (C_OUT,)
    # (O, I, KH, KW) -> (I, KH, KW, O) -> (27, C_OUT): tap k = (ci*KH + kh)*KW + kw.
    w_t = jnp.transpose(w_f, (1, 2, 3, 0)).reshape(KH * KW * C_IN, C_OUT)
    # Lane-replicate so the kernel's per-tap weight use is a pure VALU multiply.
    w_table = jnp.broadcast_to(w_t[:, :, None], (KH * KW * C_IN, C_OUT, hw))
    b_table = jnp.broadcast_to(b_f[:, None], (C_OUT, hw))
    return jnp.asarray(w_table), jnp.asarray(b_table)


def reference(x_nchw, w_oihw, b_conv, gamma, beta, running_mean, running_var):
    """Unfolded Conv2d + BatchNorm2d(eval) + ReLU reference (validates folding too)."""
    y = lax.conv_general_dilated(
        x_nchw, w_oihw, window_strides=(1, 1), padding="VALID",
        dimension_numbers=("NCHW", "OIHW", "NCHW"))
    y = y + b_conv[None, :, None, None]
    inv = (gamma * lax.rsqrt(running_var + BN_EPS))[None, :, None, None]
    y = (y - running_mean[None, :, None, None]) * inv + beta[None, :, None, None]
    return jnp.maximum(y, 0.0)


if __name__ == "__main__":
    key = jax.random.PRNGKey(0)
    k_x, k_p = jax.random.split(key)
    # Small shapes consistent with the module: (batch=2, C=3, H=16, W=16).
    x = jax.random.normal(k_x, (2, C_IN, 16, 16), jnp.float32)
    params = make_params(k_p)
    w_table, b_table = fold_bn(*params, hw=16 * 16)

    fwd = jax.jit(conv_bn_relu)
    out = jax.block_until_ready(fwd(x, w_table, b_table))

    ref = reference(x, *params)
    assert out.shape == (2, C_OUT, 14, 14), out.shape
    assert jnp.allclose(out, ref, atol=1e-4, rtol=1e-4), \
        float(jnp.max(jnp.abs(out - ref)))
    print("KERNEL_OK")
</pallas_src>

<mosaic_0001>
module attributes {stable_mosaic.version = 11 : i64} {
  func.func @_cbr_kernel(%arg0: i32, %arg1: memref<1x3x256xf32, #tpu.memory_space<vmem>>, %arg2: memref<27x16x256xf32, #tpu.memory_space<vmem>>, %arg3: memref<16x256xf32, #tpu.memory_space<vmem>>, %arg4: memref<1x16x256xf32, #tpu.memory_space<vmem>>) attributes {dimension_semantics = [#tpu.dimension_semantics<parallel>], iteration_bounds = array<i64: 2>, scalar_prefetch = 0 : i64, scratch_operands = 0 : i64, tpu.core_type = #tpu.core_type<tc>, window_params = [{transform_indices = @transform_0, window_bounds = array<i64: 1, 3, 256>}, {pipeline_mode = #tpu.pipeline_mode<synchronous>, transform_indices = @transform_1, window_bounds = array<i64: 27, 16, 256>}, {pipeline_mode = #tpu.pipeline_mode<synchronous>, transform_indices = @transform_2, window_bounds = array<i64: 16, 256>}, {transform_indices = @transform_3, window_bounds = array<i64: 1, 16, 256>}]} {
    %c0 = arith.constant 0 : index
    %c0_0 = arith.constant 0 : index
    %0 = vector.load %arg3[%c0, %c0_0] : memref<16x256xf32, #tpu.memory_space<vmem>>, vector<16x256xf32>
    %c0_1 = arith.constant 0 : index
    %c0_2 = arith.constant 0 : index
    %c0_3 = arith.constant 0 : index
    %1 = vector.load %arg1[%c0_1, %c0_2, %c0_3] : memref<1x3x256xf32, #tpu.memory_space<vmem>>, vector<1x3x256xf32>
    %2 = vector.shape_cast %1 : vector<1x3x256xf32> to vector<3x256xf32>
    %3 = vector.extract_strided_slice %2 {offsets = [0, 0], sizes = [1, 256], strides = [1, 1]} : vector<3x256xf32> to vector<1x256xf32>
    %4 = vector.shape_cast %3 : vector<1x256xf32> to vector<1x256xf32>
    %5 = vector.broadcast %4 : vector<1x256xf32> to vector<16x256xf32>
    %c0_4 = arith.constant 0 : index
    %c0_5 = arith.constant 0 : index
    %c0_6 = arith.constant 0 : index
    %6 = vector.load %arg2[%c0_4, %c0_5, %c0_6] : memref<27x16x256xf32, #tpu.memory_space<vmem>>, vector<1x16x256xf32>
    %7 = vector.shape_cast %6 : vector<1x16x256xf32> to vector<16x256xf32>
    %8 = arith.mulf %7, %5 : vector<16x256xf32>
    %9 = arith.addf %0, %8 : vector<16x256xf32>
    %c255_i32 = arith.constant 255 : i32
    %10 = tpu.dynamic_rotate %5 by %c255_i32 dim 1 : vector<16x256xf32>, i32 -> vector<16x256xf32>
    %c1 = arith.constant 1 : index
    %c0_7 = arith.constant 0 : index
    %c0_8 = arith.constant 0 : index
    %11 = vector.load %arg2[%c1, %c0_7, %c0_8] : memref<27x16x256xf32, #tpu.memory_space<vmem>>, vector<1x16x256xf32>
    %12 = vector.shape_cast %11 : vector<1x16x256xf32> to vector<16x256xf32>
    %13 = arith.mulf %12, %10 : vector<16x256xf32>
    %14 = arith.addf %9, %13 : vector<16x256xf32>
    %c254_i32 = arith.constant 254 : i32
    %15 = tpu.dynamic_rotate %5 by %c254_i32 dim 1 : vector<16x256xf32>, i32 -> vector<16x256xf32>
    %c2 = arith.constant 2 : index
    %c0_9 = arith.constant 0 : index
    %c0_10 = arith.constant 0 : index
    %16 = vector.load %arg2[%c2, %c0_9, %c0_10] : memref<27x16x256xf32, #tpu.memory_space<vmem>>, vector<1x16x256xf32>
    %17 = vector.shape_cast %16 : vector<1x16x256xf32> to vector<16x256xf32>
    %18 = arith.mulf %17, %15 : vector<16x256xf32>
    %19 = arith.addf %14, %18 : vector<16x256xf32>
    %c240_i32 = arith.constant 240 : i32
    %20 = tpu.dynamic_rotate %5 by %c240_i32 dim 1 : vector<16x256xf32>, i32 -> vector<16x256xf32>
    %c3 = arith.constant 3 : index
    %c0_11 = arith.constant 0 : index
    %c0_12 = arith.constant 0 : index
    %21 = vector.load %arg2[%c3, %c0_11, %c0_12] : memref<27x16x256xf32, #tpu.memory_space<vmem>>, vector<1x16x256xf32>
    %22 = vector.shape_cast %21 : vector<1x16x256xf32> to vector<16x256xf32>
    %23 = arith.mulf %22, %20 : vector<16x256xf32>
    %24 = arith.addf %19, %23 : vector<16x256xf32>
    %c239_i32 = arith.constant 239 : i32
    %25 = tpu.dynamic_rotate %5 by %c239_i32 dim 1 : vector<16x256xf32>, i32 -> vector<16x256xf32>
    %c4 = arith.constant 4 : index
    %c0_13 = arith.constant 0 : index
    %c0_14 = arith.constant 0 : index
    %26 = vector.load %arg2[%c4, %c0_13, %c0_14] : memref<27x16x256xf32, #tpu.memory_space<vmem>>, vector<1x16x256xf32>
    %27 = vector.shape_cast %26 : vector<1x16x256xf32> to vector<16x256xf32>
    %28 = arith.mulf %27, %25 : vector<16x256xf32>
    %29 = arith.addf %24, %28 : vector<16x256xf32>
    %c238_i32 = arith.constant 238 : i32
    %30 = tpu.dynamic_rotate %5 by %c238_i32 dim 1 : vector<16x256xf32>, i32 -> vector<16x256xf32>
    %c5 = arith.constant 5 : index
    %c0_15 = arith.constant 0 : index
    %c0_16 = arith.constant 0 : index
    %31 = vector.load %arg2[%c5, %c0_15, %c0_16] : memref<27x16x256xf32, #tpu.memory_space<vmem>>, vector<1x16x256xf32>
    %32 = vector.shape_cast %31 : vector<1x16x256xf32> to vector<16x256xf32>
    %33 = arith.mulf %32, %30 : vector<16x256xf32>
    %34 = arith.addf %29, %33 : vector<16x256xf32>
    %c224_i32 = arith.constant 224 : i32
    %35 = tpu.dynamic_rotate %5 by %c224_i32 dim 1 : vector<16x256xf32>, i32 -> vector<16x256xf32>
    %c6 = arith.constant 6 : index
    %c0_17 = arith.constant 0 : index
    %c0_18 = arith.constant 0 : index
    %36 = vector.load %arg2[%c6, %c0_17, %c0_18] : memref<27x16x256xf32, #tpu.memory_space<vmem>>, vector<1x16x256xf32>
    %37 = vector.shape_cast %36 : vector<1x16x256xf32> to vector<16x256xf32>
    %38 = arith.mulf %37, %35 : vector<16x256xf32>
    %39 = arith.addf %34, %38 : vector<16x256xf32>
    %c223_i32 = arith.constant 223 : i32
    %40 = tpu.dynamic_rotate %5 by %c223_i32 dim 1 : vector<16x256xf32>, i32 -> vector<16x256xf32>
    %c7 = arith.constant 7 : index
    %c0_19 = arith.constant 0 : index
    %c0_20 = arith.constant 0 : index
    %41 = vector.load %arg2[%c7, %c0_19, %c0_20] : memref<27x16x256xf32, #tpu.memory_space<vmem>>, vector<1x16x256xf32>
    %42 = vector.shape_cast %41 : vector<1x16x256xf32> to vector<16x256xf32>
    %43 = arith.mulf %42, %40 : vector<16x256xf32>
    %44 = arith.addf %39, %43 : vector<16x256xf32>
    %c222_i32 = arith.constant 222 : i32
    %45 = tpu.dynamic_rotate %5 by %c222_i32 dim 1 : vector<16x256xf32>, i32 -> vector<16x256xf32>
    %c8 = arith.constant 8 : index
    %c0_21 = arith.constant 0 : index
    %c0_22 = arith.constant 0 : index
    %46 = vector.load %arg2[%c8, %c0_21, %c0_22] : memref<27x16x256xf32, #tpu.memory_space<vmem>>, vector<1x16x256xf32>
    %47 = vector.shape_cast %46 : vector<1x16x256xf32> to vector<16x256xf32>
    %48 = arith.mulf %47, %45 : vector<16x256xf32>
    %49 = arith.addf %44, %48 : vector<16x256xf32>
    %50 = vector.extract_strided_slice %2 {offsets = [1, 0], sizes = [1, 256], strides = [1, 1]} : vector<3x256xf32> to vector<1x256xf32>
    %51 = vector.shape_cast %50 : vector<1x256xf32> to vector<1x256xf32>
    %52 = vector.broadcast %51 : vector<1x256xf32> to vector<16x256xf32>
    %c9 = arith.constant 9 : index
    %c0_23 = arith.constant 0 : index
    %c0_24 = arith.constant 0 : index
    %53 = vector.load %arg2[%c9, %c0_23, %c0_24] : memref<27x16x256xf32, #tpu.memory_space<vmem>>, vector<1x16x256xf32>
    %54 = vector.shape_cast %53 : vector<1x16x256xf32> to vector<16x256xf32>
    %55 = arith.mulf %54, %52 : vector<16x256xf32>
    %c255_i32_25 = arith.constant 255 : i32
    %56 = tpu.dynamic_rotate %52 by %c255_i32_25 dim 1 : vector<16x256xf32>, i32 -> vector<16x256xf32>
    %c10 = arith.constant 10 : index
    %c0_26 = arith.constant 0 : index
    %c0_27 = arith.constant 0 : index
    %57 = vector.load %arg2[%c10, %c0_26, %c0_27] : memref<27x16x256xf32, #tpu.memory_space<vmem>>, vector<1x16x256xf32>
    %58 = vector.shape_cast %57 : vector<1x16x256xf32> to vector<16x256xf32>
    %59 = arith.mulf %58, %56 : vector<16x256xf32>
    %60 = arith.addf %55, %59 : vector<16x256xf32>
    %c254_i32_28 = arith.constant 254 : i32
    %61 = tpu.dynamic_rotate %52 by %c254_i32_28 dim 1 : vector<16x256xf32>, i32 -> vector<16x256xf32>
    %c11 = arith.constant 11 : index
    %c0_29 = arith.constant 0 : index
    %c0_30 = arith.constant 0 : index
    %62 = vector.load %arg2[%c11, %c0_29, %c0_30] : memref<27x16x256xf32, #tpu.memory_space<vmem>>, vector<1x16x256xf32>
    %63 = vector.shape_cast %62 : vector<1x16x256xf32> to vector<16x256xf32>
    %64 = arith.mulf %63, %61 : vector<16x256xf32>
    %65 = arith.addf %60, %64 : vector<16x256xf32>
    %c240_i32_31 = arith.constant 240 : i32
    %66 = tpu.dynamic_rotate %52 by %c240_i32_31 dim 1 : vector<16x256xf32>, i32 -> vector<16x256xf32>
    %c12 = arith.constant 12 : index
    %c0_32 = arith.constant 0 : index
    %c0_33 = arith.constant 0 : index
    %67 = vector.load %arg2[%c12, %c0_32, %c0_33] : memref<27x16x256xf32, #tpu.memory_space<vmem>>, vector<1x16x256xf32>
    %68 = vector.shape_cast %67 : vector<1x16x256xf32> to vector<16x256xf32>
    %69 = arith.mulf %68, %66 : vector<16x256xf32>
    %70 = arith.addf %65, %69 : vector<16x256xf32>
    %c239_i32_34 = arith.constant 239 : i32
    %71 = tpu.dynamic_rotate %52 by %c239_i32_34 dim 1 : vector<16x256xf32>, i32 -> vector<16x256xf32>
    %c13 = arith.constant 13 : index
    %c0_35 = arith.constant 0 : index
    %c0_36 = arith.constant 0 : index
    %72 = vector.load %arg2[%c13, %c0_35, %c0_36] : memref<27x16x256xf32, #tpu.memory_space<vmem>>, vector<1x16x256xf32>
    %73 = vector.shape_cast %72 : vector<1x16x256xf32> to vector<16x256xf32>
    %74 = arith.mulf %73, %71 : vector<16x256xf32>
    %75 = arith.addf %70, %74 : vector<16x256xf32>
    %c238_i32_37 = arith.constant 238 : i32
    %76 = tpu.dynamic_rotate %52 by %c238_i32_37 dim 1 : vector<16x256xf32>, i32 -> vector<16x256xf32>
    %c14 = arith.constant 14 : index
    %c0_38 = arith.constant 0 : index
    %c0_39 = arith.constant 0 : index
    %77 = vector.load %arg2[%c14, %c0_38, %c0_39] : memref<27x16x256xf32, #tpu.memory_space<vmem>>, vector<1x16x256xf32>
    %78 = vector.shape_cast %77 : vector<1x16x256xf32> to vector<16x256xf32>
    %79 = arith.mulf %78, %76 : vector<16x256xf32>
    %80 = arith.addf %75, %79 : vector<16x256xf32>
    %c224_i32_40 = arith.constant 224 : i32
    %81 = tpu.dynamic_rotate %52 by %c224_i32_40 dim 1 : vector<16x256xf32>, i32 -> vector<16x256xf32>
    %c15 = arith.constant 15 : index
    %c0_41 = arith.constant 0 : index
    %c0_42 = arith.constant 0 : index
    %82 = vector.load %arg2[%c15, %c0_41, %c0_42] : memref<27x16x256xf32, #tpu.memory_space<vmem>>, vector<1x16x256xf32>
    %83 = vector.shape_cast %82 : vector<1x16x256xf32> to vector<16x256xf32>
    %84 = arith.mulf %83, %81 : vector<16x256xf32>
    %85 = arith.addf %80, %84 : vector<16x256xf32>
    %c223_i32_43 = arith.constant 223 : i32
    %86 = tpu.dynamic_rotate %52 by %c223_i32_43 dim 1 : vector<16x256xf32>, i32 -> vector<16x256xf32>
    %c16 = arith.constant 16 : index
    %c0_44 = arith.constant 0 : index
    %c0_45 = arith.constant 0 : index
    %87 = vector.load %arg2[%c16, %c0_44, %c0_45] : memref<27x16x256xf32, #tpu.memory_space<vmem>>, vector<1x16x256xf32>
    %88 = vector.shape_cast %87 : vector<1x16x256xf32> to vector<16x256xf32>
    %89 = arith.mulf %88, %86 : vector<16x256xf32>
    %90 = arith.addf %85, %89 : vector<16x256xf32>
    %c222_i32_46 = arith.constant 222 : i32
    %91 = tpu.dynamic_rotate %52 by %c222_i32_46 dim 1 : vector<16x256xf32>, i32 -> vector<16x256xf32>
    %c17 = arith.constant 17 : index
    %c0_47 = arith.constant 0 : index
    %c0_48 = arith.constant 0 : index
    %92 = vector.load %arg2[%c17, %c0_47, %c0_48] : memref<27x16x256xf32, #tpu.memory_space<vmem>>, vector<1x16x256xf32>
    %93 = vector.shape_cast %92 : vector<1x16x256xf32> to vector<16x256xf32>
    %94 = arith.mulf %93, %91 : vector<16x256xf32>
    %95 = arith.addf %90, %94 : vector<16x256xf32>
    %96 = vector.extract_strided_slice %2 {offsets = [2, 0], sizes = [1, 256], strides = [1, 1]} : vector<3x256xf32> to vector<1x256xf32>
    %97 = vector.shape_cast %96 : vector<1x256xf32> to vector<1x256xf32>
    %98 = vector.broadcast %97 : vector<1x256xf32> to vector<16x256xf32>
    %c18 = arith.constant 18 : index
    %c0_49 = arith.constant 0 : index
    %c0_50 = arith.constant 0 : index
    %99 = vector.load %arg2[%c18, %c0_49, %c0_50] : memref<27x16x256xf32, #tpu.memory_space<vmem>>, vector<1x16x256xf32>
    %100 = vector.shape_cast %99 : vector<1x16x256xf32> to vector<16x256xf32>
    %101 = arith.mulf %100, %98 : vector<16x256xf32>
    %c255_i32_51 = arith.constant 255 : i32
    %102 = tpu.dynamic_rotate %98 by %c255_i32_51 dim 1 : vector<16x256xf32>, i32 -> vector<16x256xf32>
    %c19 = arith.constant 19 : index
    %c0_52 = arith.constant 0 : index
    %c0_53 = arith.constant 0 : index
    %103 = vector.load %arg2[%c19, %c0_52, %c0_53] : memref<27x16x256xf32, #tpu.memory_space<vmem>>, vector<1x16x256xf32>
    %104 = vector.shape_cast %103 : vector<1x16x256xf32> to vector<16x256xf32>
    %105 = arith.mulf %104, %102 : vector<16x256xf32>
    %106 = arith.addf %101, %105 : vector<16x256xf32>
    %c254_i32_54 = arith.constant 254 : i32
    %107 = tpu.dynamic_rotate %98 by %c254_i32_54 dim 1 : vector<16x256xf32>, i32 -> vector<16x256xf32>
    %c20 = arith.constant 20 : index
    %c0_55 = arith.constant 0 : index
    %c0_56 = arith.constant 0 : index
    %108 = vector.load %arg2[%c20, %c0_55, %c0_56] : memref<27x16x256xf32, #tpu.memory_space<vmem>>, vector<1x16x256xf32>
    %109 = vector.shape_cast %108 : vector<1x16x256xf32> to vector<16x256xf32>
    %110 = arith.mulf %109, %107 : vector<16x256xf32>
    %111 = arith.addf %106, %110 : vector<16x256xf32>
    %c240_i32_57 = arith.constant 240 : i32
    %112 = tpu.dynamic_rotate %98 by %c240_i32_57 dim 1 : vector<16x256xf32>, i32 -> vector<16x256xf32>
    %c21 = arith.constant 21 : index
    %c0_58 = arith.constant 0 : index
    %c0_59 = arith.constant 0 : index
    %113 = vector.load %arg2[%c21, %c0_58, %c0_59] : memref<27x16x256xf32, #tpu.memory_space<vmem>>, vector<1x16x256xf32>
    %114 = vector.shape_cast %113 : vector<1x16x256xf32> to vector<16x256xf32>
    %115 = arith.mulf %114, %112 : vector<16x256xf32>
    %116 = arith.addf %111, %115 : vector<16x256xf32>
    %c239_i32_60 = arith.constant 239 : i32
    %117 = tpu.dynamic_rotate %98 by %c239_i32_60 dim 1 : vector<16x256xf32>, i32 -> vector<16x256xf32>
    %c22 = arith.constant 22 : index
    %c0_61 = arith.constant 0 : index
    %c0_62 = arith.constant 0 : index
    %118 = vector.load %arg2[%c22, %c0_61, %c0_62] : memref<27x16x256xf32, #tpu.memory_space<vmem>>, vector<1x16x256xf32>
    %119 = vector.shape_cast %118 : vector<1x16x256xf32> to vector<16x256xf32>
    %120 = arith.mulf %119, %117 : vector<16x256xf32>
    %121 = arith.addf %116, %120 : vector<16x256xf32>
    %c238_i32_63 = arith.constant 238 : i32
    %122 = tpu.dynamic_rotate %98 by %c238_i32_63 dim 1 : vector<16x256xf32>, i32 -> vector<16x256xf32>
    %c23 = arith.constant 23 : index
    %c0_64 = arith.constant 0 : index
    %c0_65 = arith.constant 0 : index
    %123 = vector.load %arg2[%c23, %c0_64, %c0_65] : memref<27x16x256xf32, #tpu.memory_space<vmem>>, vector<1x16x256xf32>
    %124 = vector.shape_cast %123 : vector<1x16x256xf32> to vector<16x256xf32>
    %125 = arith.mulf %124, %122 : vector<16x256xf32>
    %126 = arith.addf %121, %125 : vector<16x256xf32>
    %c224_i32_66 = arith.constant 224 : i32
    %127 = tpu.dynamic_rotate %98 by %c224_i32_66 dim 1 : vector<16x256xf32>, i32 -> vector<16x256xf32>
    %c24 = arith.constant 24 : index
    %c0_67 = arith.constant 0 : index
    %c0_68 = arith.constant 0 : index
    %128 = vector.load %arg2[%c24, %c0_67, %c0_68] : memref<27x16x256xf32, #tpu.memory_space<vmem>>, vector<1x16x256xf32>
    %129 = vector.shape_cast %128 : vector<1x16x256xf32> to vector<16x256xf32>
    %130 = arith.mulf %129, %127 : vector<16x256xf32>
    %131 = arith.addf %126, %130 : vector<16x256xf32>
    %c223_i32_69 = arith.constant 223 : i32
    %132 = tpu.dynamic_rotate %98 by %c223_i32_69 dim 1 : vector<16x256xf32>, i32 -> vector<16x256xf32>
    %c25 = arith.constant 25 : index
    %c0_70 = arith.constant 0 : index
    %c0_71 = arith.constant 0 : index
    %133 = vector.load %arg2[%c25, %c0_70, %c0_71] : memref<27x16x256xf32, #tpu.memory_space<vmem>>, vector<1x16x256xf32>
    %134 = vector.shape_cast %133 : vector<1x16x256xf32> to vector<16x256xf32>
    %135 = arith.mulf %134, %132 : vector<16x256xf32>
    %136 = arith.addf %131, %135 : vector<16x256xf32>
    %c222_i32_72 = arith.constant 222 : i32
    %137 = tpu.dynamic_rotate %98 by %c222_i32_72 dim 1 : vector<16x256xf32>, i32 -> vector<16x256xf32>
    %c26 = arith.constant 26 : index
    %c0_73 = arith.constant 0 : index
    %c0_74 = arith.constant 0 : index
    %138 = vector.load %arg2[%c26, %c0_73, %c0_74] : memref<27x16x256xf32, #tpu.memory_space<vmem>>, vector<1x16x256xf32>
    %139 = vector.shape_cast %138 : vector<1x16x256xf32> to vector<16x256xf32>
    %140 = arith.mulf %139, %137 : vector<16x256xf32>
    %141 = arith.addf %136, %140 : vector<16x256xf32>
    %142 = arith.addf %49, %95 : vector<16x256xf32>
    %143 = arith.addf %142, %141 : vector<16x256xf32>
    %cst = arith.constant 0.000000e+00 : f32
    %144 = vector.broadcast %cst : f32 to vector<16x256xf32>
    %145 = arith.maximumf %143, %144 : vector<16x256xf32>
    %c0_75 = arith.constant 0 : index
    %c0_76 = arith.constant 0 : index
    %c0_77 = arith.constant 0 : index
    %146 = vector.load %arg4[%c0_75, %c0_76, %c0_77] : memref<1x16x256xf32, #tpu.memory_space<vmem>>, vector<1x16x256xf32>
    %147 = vector.shape_cast %146 : vector<1x16x256xf32> to vector<16x256xf32>
    %148 = vector.shape_cast %145 : vector<16x256xf32> to vector<1x16x256xf32>
    tpu.vector_store %arg4[%c0_75, %c0_76, %c0_77], %148 {strides = array<i32>} : memref<1x16x256xf32, #tpu.memory_space<vmem>>, vector<1x16x256xf32>,
    return
  }
  func.func @transform_0(%arg0: i32) -> (i32, i32, i32) {
    %c0_i32 = arith.constant 0 : i32
    %c0_i32_0 = arith.constant 0 : i32
    %c0_i32_1 = arith.constant 0 : i32
    return %arg0, %c0_i32, %c0_i32_0 : i32, i32, i32
  }
  func.func @transform_1(%arg0: i32) -> (i32, i32, i32) {
    %c0_i32 = arith.constant 0 : i32
    %c0_i32_0 = arith.constant 0 : i32
    %c0_i32_1 = arith.constant 0 : i32
    %c0_i32_2 = arith.constant 0 : i32
    return %c0_i32, %c0_i32_0, %c0_i32_1 : i32, i32, i32
  }
  func.func @transform_2(%arg0: i32) -> (i32, i32) {
    %c0_i32 = arith.constant 0 : i32
    %c0_i32_0 = arith.constant 0 : i32
    %c0_i32_1 = arith.constant 0 : i32
    return %c0_i32, %c0_i32_0 : i32, i32
  }
  func.func @transform_3(%arg0: i32) -> (i32, i32, i32) {
    %c0_i32 = arith.constant 0 : i32
    %c0_i32_0 = arith.constant 0 : i32
    %c0_i32_1 = arith.constant 0 : i32
    return %arg0, %c0_i32, %c0_i32_0 : i32, i32, i32
  }
}

</mosaic_0001>

<bundles_post_ra>
// kernel: conv_bn_relu.1
= control target key start
LH: loop header
LB: loop body
LE: loop exit
PB: predicated region body
PF: predicated region fallthrough
CT: control target
= control target key end

     0   :  { %8 = vsyncpa [#allocation3], 0  ;;  %s908_s12 = smov 0   ;;  %s1288_s0 = inlined_call_operand.vmem [shape: f32[2,3,256], index: 0, kind: input, shape index: {}]   ;;  %s1289_s1 = inlined_call_operand.hbm [shape: f32[27,16,256], index: 1, kind: input, shape index: {}]   ;;  %s1290_s2 = inlined_call_operand.vmem [shape: f32[16,256], index: 2, kind: input, shape index: {}]   ;;  %s1291_s3 = inlined_call_operand.vmem [shape: f32[2,16,256], index: 3, kind: output, shape index: {}]  }
   0x1 LB: > { %s124_s15 = sshll.u32 %s1289_s1, 4  ;;  %s791_s16 = sadd.s32 4294967295, %s875_s12   ;;  %s875_s12 = sphi %s908_s12, %s14_s12   ;;  %s125_s15 = int_to_ptr.hbm [resolvable:$true] %s124_s15 }
   0x2   : > { %p793_p0 = scmp.ge.s32.totalorder %s875_s12, 1  ;;  %p113_p1 = scmp.lt.s32.totalorder %s875_s12, 3 }
   0x3   : > { %p814_p2 = scmp.eq.s32.totalorder %s791_s16, 0  ;;  %s877_s17 = smov [#allocation2]  }
   0x4   : > { %p114_p3 = pnand %p793_p0, %p113_p1  ;;  %s126_s18 = sshll.u32 %s877_s17, 4  ;;  %s127_s18 = int_to_ptr.vmem [resolvable:$true] %s126_s18 }
   0x5   : > { %s878_s19 = smov 256   ;;  %s879_s20 = smov 16  }
   0x6   : > { %p810_p4 = pneg %p114_p3  ;;  %153 = sbr.rel (%p114_p3) target bundleno = 272 (0x110), region = 32 }
   0x8   : > { %p811_p5 = pnand %p814_p2, %p810_p4 }
   0xa   : > { %813 = dma.hbm_to_vmem [thread:$0]  (!%p811_p5), %s125_s15, 13824, %s127_s18, [#allocation3], %s878_s19, %s878_s19, %s879_s20  }
   0xb   : > { %870 = dma.done.wait (%p814_p2), [#allocation3], 13824  }
   0xc   : > { %872 = vsyncadd (%p814_p2), [#allocation3], 4294953472  ;;  %p178_p6 = scmp.lt.s32.totalorder %s791_s16, 1  ;;  %s880_s25 = smov 126   ;;  %v216_v13 = vlaneseq  ;;  %v200_v22 = vld [vmem:[#allocation2] sm:$0xff]  ;;  %v201_v23 = vld [vmem:[#allocation2 + $0x8] sm:$0xff] }
   0xd   : > { %s881_s26 = smov 127   ;;  %s882_s27 = smov 112   ;;  %v202_v24 = vld [vmem:[#allocation2 + $0x10] sm:$0xff]  ;;  %v203_v25 = vld [vmem:[#allocation2 + $0x18] sm:$0xff]  ;;  %v188_v29 = vld [vmem:[%s1290_s2] sm:$0xff] }
   0xe   : > { %s1293_s16 = smov (!%p178_p6, %s791_s16), 1  ;;  %s883_s28 = smov 111   ;;  %v1009_v15 = vand.u32 127, %v216_v13  ;;  %v189_v32 = vld [vmem:[%s1290_s2 + $0x8] sm:$0xff]  ;;  %v190_v33 = vld [vmem:[%s1290_s2 + $0x10] sm:$0xff]  ;;  %v191_v34 = vld [vmem:[%s1290_s2 + $0x18] sm:$0xff] }
   0xf   : > { %s804_s21 = sshll.u32 %s1293_s16, 3  ;;  %s884_s29 = smov 110   ;;  %v242_v35 = vld [vmem:[#allocation2 + $0x40] sm:$0xff]  ;;  %v223_v38 = vld [vmem:[#allocation2 + $0x28] sm:$0xff]  ;;  %v224_v39 = vld [vmem:[#allocation2 + $0x30] sm:$0xff] }
  0x10   : > { %s182_s24 = scalar_lea.vmem %s1288_s0, %s804_s21  ;;  %s885_s30 = smov 96   ;;  %vm258_vm0 = vcmp.lt.s32.totalorder %v1009_v15, 112  ;;  %vm238_vm1 = vcmp.lt.s32.totalorder %v1009_v15, 126  ;;  %vm218_vm2 = vcmp.lt.s32.totalorder %v1009_v15, 127  ;;  %v222_v36 = vld [vmem:[#allocation2 + $0x20] sm:$0xff]  ;;  %v225_v40 = vld [vmem:[#allocation2 + $0x38] sm:$0xff] }
  0x11   : > { %v192_v0 = vld [vmem:[%s182_s24] sm:$0x77]  ;;  %s886_s4 = smov 95   ;;  %s887_s5 = smov 94   ;;  %v243_v46 = vld [vmem:[#allocation2 + $0x48] sm:$0xff]  ;;  %v244_v47 = vld [vmem:[#allocation2 + $0x50] sm:$0xff] }
  0x12   : > { %v194_v1 = vperm.slane %v192_v0, 0  ;;  %v195_v3 = vperm.slane %v192_v0, 4  ;;  %v374_v5 = vperm.slane %v192_v0, 1  ;;  %v375_v6 = vperm.slane %v192_v0, 5  ;;  %v245_v48 = vld [vmem:[#allocation2 + $0x58] sm:$0xff]  ;;  %v262_v54 = vld [vmem:[#allocation2 + $0x60] sm:$0xff] }
  0x13   : > { %v541_v9 = vperm.slane %v192_v0, 2  ;;  %v542_v10 = vperm.slane %v192_v0, 6  ;;  %vm278_vm3 = vcmp.lt.s32.totalorder %v1009_v15, 111  ;;  %v263_v55 = vld [vmem:[#allocation2 + $0x68] sm:$0xff]  ;;  %v264_v56 = vld [vmem:[#allocation2 + $0x70] sm:$0xff]  ;;  %v265_v57 = vld [vmem:[#allocation2 + $0x78] sm:$0xff] }
  0x14   : > { %v925_v2 = vperm.slane %v194_v1, 0  ;;  %v933_v4 = vperm.slane %v195_v3, 0  ;;  %v959_v7 = vperm.slane %v374_v5, 1  ;;  %v961_v8 = vperm.slane %v375_v6, 1  ;;  %s805_s15 = sshll.u32 %s1293_s16, 5 }
  0x15   : > { %v987_v11 = vperm.slane %v541_v9, 2  ;;  %v989_v12 = vperm.slane %v542_v10, 2  ;;  %vm318_vm4 = vcmp.lt.s32.totalorder %v1009_v15, 96  ;;  %vm298_vm5 = vcmp.lt.s32.totalorder %v1009_v15, 110  ;;  %s187_s19 = scalar_lea.vmem %s1291_s3, %s805_s15 }
  0x16   : > { %234 = vrot.lane.b32.xlu1 %v925_v2, %s880_s25  ;;  %212 = vrot.lane.b32.xlu0 %v925_v2, %s881_s26  ;;  %v205_v27 = vmul.f32 %v201_v23, %v933_v4  ;;  %v207_v28 = vmul.f32 %v203_v25, %v933_v4  ;;  %v204_v30 = vmul.f32 %v200_v22, %v925_v2  ;;  %v282_v22 = vld [vmem:[#allocation2 + $0x80] sm:$0xff]  ;;  %v284_v25 = vld [vmem:[#allocation2 + $0x90] sm:$0xff]  ;;  %vm338_vm6 = vcmp.lt.s32.totalorder %v1009_v15, 95 }
  0x17   : > { %254 = vrot.lane.b32.xlu2 %v925_v2, %s882_s27  ;;  %v206_v31 = vmul.f32 %v202_v24, %v925_v2  ;;  %v283_v24 = vld [vmem:[#allocation2 + $0x88] sm:$0xff]  ;;  %vm358_vm7 = vcmp.lt.s32.totalorder %v1009_v15, 94 }
  0x18   : > { %v208_v42 = vadd.f32 %v204_v30, %v188_v29  ;;  %v209_v43 = vadd.f32 %v205_v27, %v189_v32  ;;  %v211_v45 = vadd.f32 %v207_v28, %v191_v34  ;;  %v285_v27 = vld [vmem:[#allocation2 + $0x98] sm:$0xff] }
  0x19   : > { %v210_v44 = vadd.f32 %v206_v31, %v190_v33 }
  0x1e   : > { %236 = vrot.lane.b32.xlu1 %v933_v4, %s880_s25  ;;  %214 = vrot.lane.b32.xlu0 %v933_v4, %s881_s26 }
  0x1f   : > { %256 = vrot.lane.b32.xlu2 %v933_v4, %s882_s27 }
  0x26   : > { %276 = vrot.lane.b32.xlu1 %v933_v4, %s883_s28  ;;  %274 = vrot.lane.b32.xlu0 %v925_v2, %s883_s28 }
  0x27   : > { %294 = vrot.lane.b32.xlu2 %v925_v2, %s884_s29 }
  0x2e   : > { %314 = vrot.lane.b32.xlu1 %v925_v2, %s885_s30  ;;  %296 = vrot.lane.b32.xlu0 %v933_v4, %s884_s29 }
  0x2f   : > { %316 = vrot.lane.b32.xlu2 %v933_v4, %s885_s30 }
  0x36   : > { %336 = vrot.lane.b32.xlu1 %v933_v4, %s886_s4  ;;  %334 = vrot.lane.b32.xlu0 %v925_v2, %s886_s4 }
  0x37   : > { %354 = vrot.lane.b32.xlu2 %v925_v2, %s887_s5 }
  0x3e   : > { %389 = vrot.lane.b32.xlu1 %v959_v7, %s881_s26  ;;  %356 = vrot.lane.b32.xlu0 %v933_v4, %s887_s5 }
  0x3f   : > { %391 = vrot.lane.b32.xlu2 %v961_v8, %s881_s26 }
  0x46   : > { %410 = vrot.lane.b32.xlu1 %v961_v8, %s880_s25  ;;  %408 = vrot.lane.b32.xlu0 %v959_v7, %s880_s25 }
  0x47   : > { %427 = vrot.lane.b32.xlu2 %v959_v7, %s882_s27 }
  0x4e   : > { %446 = vrot.lane.b32.xlu1 %v959_v7, %s883_s28  ;;  %429 = vrot.lane.b32.xlu0 %v961_v8, %s882_s27 }
  0x4f   : > { %448 = vrot.lane.b32.xlu2 %v961_v8, %s883_s28 }
  0x56   : > { %467 = vrot.lane.b32.xlu1 %v961_v8, %s884_s29  ;;  %465 = vrot.lane.b32.xlu0 %v959_v7, %s884_s29 }
  0x57   : > { %484 = vrot.lane.b32.xlu2 %v959_v7, %s885_s30 }
  0x5e   : > { %556 = vrot.lane.b32.xlu1 %v987_v11, %s881_s26  ;;  %486 = vrot.lane.b32.xlu0 %v961_v8, %s885_s30 }
  0x5f   : > { %558 = vrot.lane.b32.xlu2 %v989_v12, %s881_s26 }
  0x66   : > { %577 = vrot.lane.b32.xlu1 %v989_v12, %s880_s25  ;;  %575 = vrot.lane.b32.xlu0 %v987_v11, %s880_s25 }
  0x67   : > { %594 = vrot.lane.b32.xlu2 %v987_v11, %s882_s27 }
  0x6e   : > { %613 = vrot.lane.b32.xlu1 %v987_v11, %s883_s28  ;;  %596 = vrot.lane.b32.xlu0 %v989_v12, %s882_s27 }
  0x6f   : > { %615 = vrot.lane.b32.xlu2 %v989_v12, %s883_s28 }
  0x71   : > { %v255_v14 = vpop.permute.xlu2 %254 }
  0x76   : > { %634 = vrot.lane.b32.xlu1 %v989_v12, %s884_s29  ;;  %632 = vrot.lane.b32.xlu0 %v987_v11, %s884_s29 }
  0x77   : > { %503 = vrot.lane.b32.xlu2 %v959_v7, %s886_s4 }
  0x79   : > { %v257_v16 = vpop.permute.xlu2 %256 }
  0x7a   : > { %v1020_v17 = vsel %vm258_vm0, %v255_v14, %v257_v16  ;;  %v1024_v18 = vsel %vm258_vm0, %v257_v16, %v255_v14 }
  0x7b   : > { %v266_v6 = vmul.f32 %v262_v54, %v1020_v17  ;;  %v267_v9 = vmul.f32 %v263_v55, %v1024_v18  ;;  %v268_v10 = vmul.f32 %v264_v56, %v1020_v17  ;;  %v269_v13 = vmul.f32 %v265_v57, %v1024_v18 }
  0x7e   : > { %651 = vrot.lane.b32.xlu1 %v987_v11, %s885_s30  ;;  %505 = vrot.lane.b32.xlu0 %v961_v8, %s886_s4 }
  0x7f   : > { %653 = vrot.lane.b32.xlu2 %v989_v12, %s885_s30 }
  0x81   : > { %v1032_v19 = vpop.permute.xlu2 %294 }
  0x86   : > { %524 = vrot.lane.b32.xlu1 %v961_v8, %s887_s5  ;;  %522 = vrot.lane.b32.xlu0 %v959_v7, %s887_s5 }
  0x87   : > { %670 = vrot.lane.b32.xlu2 %v987_v11, %s886_s4 }
  0x88   : > { %v235_v20 = vpop.permute.xlu1 %234  ;;  %v213_v21 = vpop.permute.xlu0 %212 }
  0x89   : > { %v1040_v26 = vpop.permute.xlu2 %316 }
  0x8e   : > { %672 = vrot.lane.b32.xlu0 %v989_v12, %s886_s4  ;;  %689 = vrot.lane.b32.xlu1 %v987_v11, %s887_s5 }
  0x8f   : > { %691 = vrot.lane.b32.xlu2 %v989_v12, %s887_s5 }
  0x90   : > { %v237_v37 = vpop.permute.xlu1 %236  ;;  %v215_v41 = vpop.permute.xlu0 %214 }
  0x91   : > { %v239_v49 = vsel %vm238_vm1, %v235_v20, %v237_v37  ;;  %v240_v50 = vsel %vm238_vm1, %v237_v37, %v235_v20  ;;  %v219_v51 = vsel %vm218_vm2, %v213_v21, %v215_v41  ;;  %v220_v52 = vsel %vm218_vm2, %v215_v41, %v213_v21  ;;  %v1074_v53 = vpop.permute.xlu2 %354 }
  0x92   : > { %v226_v58 = vmul.f32 %v222_v36, %v219_v51  ;;  %v227_v59 = vmul.f32 %v223_v38, %v220_v52  ;;  %v228_v60 = vmul.f32 %v224_v39, %v219_v51  ;;  %v229_v61 = vmul.f32 %v225_v40, %v220_v52 }
  0x93   : > { %v246_v62 = vmul.f32 %v242_v35, %v239_v49  ;;  %v247_v63 = vmul.f32 %v243_v46, %v240_v50  ;;  %v248_v0 = vmul.f32 %v244_v47, %v239_v49  ;;  %v249_v1 = vmul.f32 %v245_v48, %v240_v50  ;;  %v302_v46 = vld [vmem:[#allocation2 + $0xa0] sm:$0xff]  ;;  %v303_v48 = vld [vmem:[#allocation2 + $0xa8] sm:$0xff]  ;;  %v304_v49 = vld [vmem:[#allocation2 + $0xb0] sm:$0xff] }
  0x94   : > { %v230_v2 = vadd.f32 %v226_v58, %v208_v42  ;;  %v231_v3 = vadd.f32 %v227_v59, %v209_v43  ;;  %v232_v4 = vadd.f32 %v228_v60, %v210_v44  ;;  %v233_v5 = vadd.f32 %v229_v61, %v211_v45  ;;  %v322_v42 = vld [vmem:[#allocation2 + $0xc0] sm:$0xff]  ;;  %v323_v43 = vld [vmem:[#allocation2 + $0xc8] sm:$0xff]  ;;  %v324_v44 = vld [vmem:[#allocation2 + $0xd0] sm:$0xff] }
  0x95   : > { %v325_v45 = vld [vmem:[#allocation2 + $0xd8] sm:$0xff] }
  0x96   : > { %v250_v14 = vadd.f32 %v246_v62, %v230_v2  ;;  %v251_v16 = vadd.f32 %v247_v63, %v231_v3  ;;  %v252_v20 = vadd.f32 %v248_v0, %v232_v4  ;;  %v253_v21 = vadd.f32 %v249_v1, %v233_v5  ;;  %v305_v50 = vld [vmem:[#allocation2 + $0xb8] sm:$0xff]  ;;  %v342_v5 = vld [vmem:[#allocation2 + $0xe0] sm:$0xff] }
  0x98   : > { %v277_v23 = vpop.permute.xlu1 %276  ;;  %v275_v28 = vpop.permute.xlu0 %274  ;;  %v270_v29 = vadd.f32 %v266_v6, %v250_v14  ;;  %v271_v30 = vadd.f32 %v267_v9, %v251_v16  ;;  %v272_v31 = vadd.f32 %v268_v10, %v252_v20  ;;  %v273_v32 = vadd.f32 %v269_v13, %v253_v21  ;;  %v343_v6 = vld [vmem:[#allocation2 + $0xe8] sm:$0xff]  ;;  %v344_v9 = vld [vmem:[#allocation2 + $0xf0] sm:$0xff] }
  0x99   : > { %v279_v33 = vsel %vm278_vm3, %v275_v28, %v277_v23  ;;  %v280_v17 = vsel %vm278_vm3, %v277_v23, %v275_v28  ;;  %v1085_v37 = vpop.permute.xlu2 %391 }
  0x9a   : > { %v286_v18 = vmul.f32 %v282_v22, %v279_v33  ;;  %v287_v34 = vmul.f32 %v283_v24, %v280_v17  ;;  %v288_v35 = vmul.f32 %v284_v25, %v279_v33  ;;  %v289_v36 = vmul.f32 %v285_v27, %v280_v17  ;;  %v362_v33 = vld [vmem:[#allocation2 + $0x100] sm:$0xff] }
  0x9c   : > { %v290_v38 = vadd.f32 %v286_v18, %v270_v29  ;;  %v291_v39 = vadd.f32 %v287_v34, %v271_v30  ;;  %v292_v40 = vadd.f32 %v288_v35, %v272_v31  ;;  %v293_v41 = vadd.f32 %v289_v36, %v273_v32  ;;  %v363_v34 = vld [vmem:[#allocation2 + $0x108] sm:$0xff]  ;;  %v364_v35 = vld [vmem:[#allocation2 + $0x110] sm:$0xff]  ;;  %v365_v36 = vld [vmem:[#allocation2 + $0x118] sm:$0xff] }
  0xa0   : > { %v315_v47 = vpop.permute.xlu1 %314  ;;  %v297_v51 = vpop.permute.xlu0 %296 }
  0xa1   : > { %v319_v52 = vsel %vm318_vm4, %v315_v47, %v1040_v26  ;;  %v320_v54 = vsel %vm318_vm4, %v1040_v26, %v315_v47  ;;  %v299_v55 = vsel %vm298_vm5, %v1032_v19, %v297_v51  ;;  %v300_v56 = vsel %vm298_vm5, %v297_v51, %v1032_v19  ;;  %v1101_v4 = vpop.permute.xlu2 %427  ;;  %v345_v19 = vld [vmem:[#allocation2 + $0xf8] sm:$0xff] }
  0xa2   : > { %v326_v57 = vmul.f32 %v322_v42, %v319_v52  ;;  %v327_v58 = vmul.f32 %v323_v43, %v320_v54  ;;  %v328_v59 = vmul.f32 %v324_v44, %v319_v52  ;;  %v329_v60 = vmul.f32 %v325_v45, %v320_v54 }
  0xa3   : > { %v306_v61 = vmul.f32 %v302_v46, %v299_v55  ;;  %v307_v62 = vmul.f32 %v303_v48, %v300_v56  ;;  %v308_v63 = vmul.f32 %v304_v49, %v299_v55  ;;  %v309_v0 = vmul.f32 %v305_v50, %v300_v56 }
  0xa5   : > { %v310_v1 = vadd.f32 %v306_v61, %v290_v38  ;;  %v311_v2 = vadd.f32 %v307_v62, %v291_v39  ;;  %v312_v3 = vadd.f32 %v308_v63, %v292_v40  ;;  %v313_v26 = vadd.f32 %v309_v0, %v293_v41  ;;  %v381_v61 = vld [vmem:[#allocation2 + $0x120] sm:$0xff]  ;;  %v382_v62 = vld [vmem:[#allocation2 + $0x128] sm:$0xff] }
  0xa6   : > { %v396_v63 = vld [vmem:[#allocation2 + $0x140] sm:$0xff]  ;;  %v397_v0 = vld [vmem:[#allocation2 + $0x148] sm:$0xff] }
  0xa7   : > { %v330_v10 = vadd.f32 %v326_v57, %v310_v1  ;;  %v331_v13 = vadd.f32 %v327_v58, %v311_v2  ;;  %v332_v14 = vadd.f32 %v328_v59, %v312_v3  ;;  %v333_v16 = vadd.f32 %v329_v60, %v313_v26  ;;  %v383_v1 = vld [vmem:[#allocation2 + $0x130] sm:$0xff]  ;;  %v384_v2 = vld [vmem:[#allocation2 + $0x138] sm:$0xff] }
  0xa8   : > { %v337_v20 = vpop.permute.xlu1 %336  ;;  %v335_v21 = vpop.permute.xlu0 %334  ;;  %v385_v26 = vmul.f32 %v381_v61, %v959_v7 }
  0xa9   : > { %v339_v22 = vsel %vm338_vm6, %v335_v21, %v337_v20  ;;  %v340_v23 = vsel %vm338_vm6, %v337_v20, %v335_v21  ;;  %v1109_v17 = vpop.permute.xlu2 %448  ;;  %v416_v20 = vld [vmem:[#allocation2 + $0x168] sm:$0xff] }
  0xaa   : > { %v346_v24 = vmul.f32 %v342_v5, %v339_v22  ;;  %v347_v25 = vmul.f32 %v343_v6, %v340_v23  ;;  %v348_v27 = vmul.f32 %v344_v9, %v339_v22  ;;  %v349_v28 = vmul.f32 %v345_v19, %v340_v23  ;;  %v398_v6 = vld [vmem:[#allocation2 + $0x150] sm:$0xff]  ;;  %v399_v9 = vld [vmem:[#allocation2 + $0x158] sm:$0xff] }
  0xab   : > { %v386_v5 = vmul.f32 %v382_v62, %v961_v8  ;;  %v387_v23 = vmul.f32 %v383_v1, %v959_v7  ;;  %v437_v7 = vld [vmem:[#allocation2 + $0x198] sm:$0xff] }
  0xac   : > { %v350_v29 = vadd.f32 %v346_v24, %v330_v10  ;;  %v351_v30 = vadd.f32 %v347_v25, %v331_v13  ;;  %v352_v31 = vadd.f32 %v348_v27, %v332_v14  ;;  %v353_v32 = vadd.f32 %v349_v28, %v333_v16  ;;  %v415_v16 = vld [vmem:[#allocation2 + $0x160] sm:$0xff]  ;;  %v417_v25 = vld [vmem:[#allocation2 + $0x170] sm:$0xff]  ;;  %v418_v27 = vld [vmem:[#allocation2 + $0x178] sm:$0xff] }
  0xad   : > { %v388_v24 = vmul.f32 %v384_v2, %v961_v8 }
  0xb0   : > { %v390_v18 = vpop.permute.xlu1 %389  ;;  %v357_v38 = vpop.permute.xlu0 %356 }
  0xb1   : > { %v393_v39 = vsel %vm218_vm2, %v390_v18, %v1085_v37  ;;  %v394_v40 = vsel %vm218_vm2, %v1085_v37, %v390_v18  ;;  %v359_v41 = vsel %vm358_vm7, %v1074_v53, %v357_v38  ;;  %v360_v42 = vsel %vm358_vm7, %v357_v38, %v1074_v53  ;;  %v1131_v52 = vpop.permute.xlu2 %484 }
  0xb2   : > { %v366_v43 = vmul.f32 %v362_v33, %v359_v41  ;;  %v367_v44 = vmul.f32 %v363_v34, %v360_v42  ;;  %v368_v45 = vmul.f32 %v364_v35, %v359_v41  ;;  %v369_v46 = vmul.f32 %v365_v36, %v360_v42  ;;  %v436_v35 = vld [vmem:[#allocation2 + $0x190] sm:$0xff] }
  0xb3   : > { %v400_v13 = vmul.f32 %v396_v63, %v393_v39  ;;  %v401_v14 = vmul.f32 %v397_v0, %v394_v40  ;;  %v402_v28 = vmul.f32 %v398_v6, %v393_v39  ;;  %v453_v39 = vld [vmem:[#allocation2 + $0x1a0] sm:$0xff] }
  0xb4   : > { %v1123_v47 = vadd.f32 %v366_v43, %v350_v29  ;;  %v1125_v48 = vadd.f32 %v367_v44, %v351_v30  ;;  %v1127_v49 = vadd.f32 %v368_v45, %v352_v31  ;;  %v1129_v50 = vadd.f32 %v369_v46, %v353_v32  ;;  %v434_v30 = vld [vmem:[#allocation2 + $0x180] sm:$0xff]  ;;  %v435_v31 = vld [vmem:[#allocation2 + $0x188] sm:$0xff] }
  0xb5   : > { %v403_v29 = vmul.f32 %v399_v9, %v394_v40  ;;  %v404_v36 = vadd.f32 %v400_v13, %v385_v26  ;;  %v405_v8 = vadd.f32 %v401_v14, %v386_v5  ;;  %v454_v40 = vld [vmem:[#allocation2 + $0x1a8] sm:$0xff]  ;;  %v406_v45 = vadd.f32 %v402_v28, %v387_v23  ;;  %v548_v9 = vld [vmem:[#allocation2 + $0x240] sm:$0xff] }
  0xb7   : > { %v407_v46 = vadd.f32 %v403_v29, %v388_v24 }
  0xb8   : > { %v411_v37 = vpop.permute.xlu1 %410  ;;  %v409_v51 = vpop.permute.xlu0 %408 }
  0xb9   : > { %v1133_v56 = vpop.permute.xlu2 %558  ;;  %v412_v21 = vsel %vm238_vm1, %v409_v51, %v411_v37  ;;  %v413_v22 = vsel %vm238_vm1, %v411_v37, %v409_v51  ;;  %v455_v37 = vld [vmem:[#allocation2 + $0x1b0] sm:$0xff]  ;;  %v456_v51 = vld [vmem:[#allocation2 + $0x1b8] sm:$0xff] }
  0xba   : > { %v419_v18 = vmul.f32 %v415_v16, %v412_v21  ;;  %v420_v34 = vmul.f32 %v416_v20, %v413_v22  ;;  %v421_v38 = vmul.f32 %v417_v25, %v412_v21  ;;  %v422_v41 = vmul.f32 %v418_v27, %v413_v22  ;;  %v550_v20 = vld [vmem:[#allocation2 + $0x250] sm:$0xff]  ;;  %v551_v21 = vld [vmem:[#allocation2 + $0x258] sm:$0xff]  ;;  %v472_v25 = vld [vmem:[#allocation2 + $0x1c0] sm:$0xff] }
  0xbb   : > { %v473_v27 = vld [vmem:[#allocation2 + $0x1c8] sm:$0xff] }
  0xbc   : > { %v423_v62 = vadd.f32 %v419_v18, %v404_v36  ;;  %v424_v63 = vadd.f32 %v420_v34, %v405_v8  ;;  %v425_v2 = vadd.f32 %v421_v38, %v406_v45  ;;  %v426_v26 = vadd.f32 %v422_v41, %v407_v46  ;;  %v563_v34 = vld [vmem:[#allocation2 + $0x260] sm:$0xff]  ;;  %v475_v8 = vld [vmem:[#allocation2 + $0x1d8] sm:$0xff]  ;;  %v583_v46 = vld [vmem:[#allocation2 + $0x288] sm:$0xff] }
  0xbd   : > { %v555_v18 = vmul.f32 %v551_v21, %v989_v12  ;;  %v582_v45 = vld [vmem:[#allocation2 + $0x280] sm:$0xff] }
  0xc0   : > { %v447_v54 = vpop.permute.xlu1 %446  ;;  %v430_v55 = vpop.permute.xlu0 %429 }
  0xc1   : > { %v1139_v58 = vpop.permute.xlu2 %594  ;;  %v431_v32 = vsel %vm258_vm0, %v1101_v4, %v430_v55  ;;  %v432_v33 = vsel %vm258_vm0, %v430_v55, %v1101_v4  ;;  %v450_v42 = vsel %vm278_vm3, %v447_v54, %v1109_v17  ;;  %v451_v43 = vsel %vm278_vm3, %v1109_v17, %v447_v54  ;;  %v549_v17 = vld [vmem:[#allocation2 + $0x248] sm:$0xff] }
  0xc2   : > { %v438_v44 = vmul.f32 %v434_v30, %v431_v32  ;;  %v439_v4 = vmul.f32 %v435_v31, %v432_v33  ;;  %v440_v55 = vmul.f32 %v436_v35, %v431_v32  ;;  %v441_v61 = vmul.f32 %v437_v7, %v432_v33  ;;  %v474_v32 = vld [vmem:[#allocation2 + $0x1d0] sm:$0xff]  ;;  %v564_v35 = vld [vmem:[#allocation2 + $0x268] sm:$0xff] }
  0xc3   : > { %v457_v5 = vmul.f32 %v453_v39, %v450_v42  ;;  %v458_v6 = vmul.f32 %v454_v40, %v451_v43  ;;  %v459_v54 = vmul.f32 %v455_v37, %v450_v42  ;;  %v460_v13 = vmul.f32 %v456_v51, %v451_v43  ;;  %v566_v39 = vld [vmem:[#allocation2 + $0x278] sm:$0xff]  ;;  %v491_v42 = vld [vmem:[#allocation2 + $0x1e0] sm:$0xff]  ;;  %v492_v43 = vld [vmem:[#allocation2 + $0x1e8] sm:$0xff] }
  0xc4   : > { %v442_v14 = vadd.f32 %v438_v44, %v423_v62  ;;  %v443_v16 = vadd.f32 %v439_v4, %v424_v63  ;;  %v444_v23 = vadd.f32 %v440_v55, %v425_v2  ;;  %v445_v24 = vadd.f32 %v441_v61, %v426_v26  ;;  %v584_v2 = vld [vmem:[#allocation2 + $0x290] sm:$0xff]  ;;  %v585_v26 = vld [vmem:[#allocation2 + $0x298] sm:$0xff] }
  0xc5   : > { %v552_v30 = vmul.f32 %v548_v9, %v987_v11  ;;  %v553_v31 = vmul.f32 %v549_v17, %v989_v12  ;;  %v554_v33 = vmul.f32 %v550_v20, %v987_v11  ;;  %v565_v11 = vld [vmem:[#allocation2 + $0x270] sm:$0xff] }
  0xc6   : > { %v462_v36 = vadd.f32 %v458_v6, %v443_v16  ;;  %v1197_v12 = vadd.f32 %v459_v54, %v444_v23  ;;  %v1199_v40 = vadd.f32 %v460_v13, %v445_v24  ;;  %v601_v54 = vld [vmem:[#allocation2 + $0x2a0] sm:$0xff]  ;;  %v602_v16 = vld [vmem:[#allocation2 + $0x2a8] sm:$0xff]  ;;  %v603_v20 = vld [vmem:[#allocation2 + $0x2b0] sm:$0xff] }
  0xc8   : > { %v1135_v53 = vpop.permute.xlu1 %467  ;;  %v1137_v57 = vpop.permute.xlu0 %465 }
  0xc9   : > { %v1145_v3 = vpop.permute.xlu2 %615  ;;  %v469_v28 = vsel %vm298_vm5, %v1137_v57, %v1135_v53  ;;  %v470_v29 = vsel %vm298_vm5, %v1135_v53, %v1137_v57  ;;  %v461_v57 = vadd.f32 %v457_v5, %v442_v14 }
  0xca   : > { %v476_v38 = vmul.f32 %v472_v25, %v469_v28  ;;  %v477_v41 = vmul.f32 %v473_v27, %v470_v29  ;;  %v478_v62 = vmul.f32 %v474_v32, %v469_v28  ;;  %v493_v25 = vld [vmem:[#allocation2 + $0x1f0] sm:$0xff]  ;;  %v494_v27 = vld [vmem:[#allocation2 + $0x1f8] sm:$0xff] }
  0xcc   : > { %v480_v5 = vadd.f32 %v476_v38, %v461_v57  ;;  %v481_v6 = vadd.f32 %v477_v41, %v462_v36 }
  0xd0   : > { %v1141_v59 = vpop.permute.xlu1 %556  ;;  %v1143_v60 = vpop.permute.xlu0 %486 }
  0xd1   : > { %v1175_v22 = vpop.permute.xlu2 %503  ;;  %v560_v7 = vsel %vm218_vm2, %v1141_v59, %v1133_v56  ;;  %v561_v53 = vsel %vm218_vm2, %v1133_v56, %v1141_v59  ;;  %v488_v44 = vsel %vm318_vm4, %v1131_v52, %v1143_v60  ;;  %v489_v56 = vsel %vm318_vm4, %v1143_v60, %v1131_v52 }
  0xd2   : > { %v567_v59 = vmul.f32 %v563_v34, %v560_v7  ;;  %v568_v4 = vmul.f32 %v564_v35, %v561_v53  ;;  %v479_v52 = vmul.f32 %v475_v8, %v470_v29  ;;  %v569_v60 = vmul.f32 %v565_v11, %v560_v7  ;;  %v620_v7 = vld [vmem:[#allocation2 + $0x2c0] sm:$0xff] }
  0xd3   : > { %v570_v63 = vmul.f32 %v566_v39, %v561_v53  ;;  %v495_v9 = vmul.f32 %v491_v42, %v488_v44  ;;  %v496_v17 = vmul.f32 %v492_v43, %v489_v56  ;;  %v621_v53 = vld [vmem:[#allocation2 + $0x2c8] sm:$0xff] }
  0xd4   : > { %v571_v23 = vadd.f32 %v567_v59, %v552_v30  ;;  %v572_v24 = vadd.f32 %v568_v4, %v553_v31  ;;  %v573_v34 = vadd.f32 %v569_v60, %v554_v33  ;;  %v623_v30 = vld [vmem:[#allocation2 + $0x2d8] sm:$0xff]  ;;  %v497_v33 = vmul.f32 %v493_v25, %v488_v44 }
  0xd5   : > { %v574_v35 = vadd.f32 %v570_v63, %v555_v18  ;;  %v498_v18 = vmul.f32 %v494_v27, %v489_v56 }
  0xd8   : > { %v1149_v19 = vpop.permute.xlu1 %577  ;;  %v1151_v10 = vpop.permute.xlu0 %575 }
  0xd9   : > { %v579_v37 = vsel %vm238_vm1, %v1151_v10, %v1149_v19  ;;  %v580_v51 = vsel %vm238_vm1, %v1149_v19, %v1151_v10  ;;  %v604_v19 = vld [vmem:[#allocation2 + $0x2b8] sm:$0xff]  ;;  %v1229_v32 = vpop.permute.xlu2 %653 }
  0xda   : > { %v586_v13 = vmul.f32 %v582_v45, %v579_v37  ;;  %v587_v14 = vmul.f32 %v583_v46, %v580_v51  ;;  %v588_v28 = vmul.f32 %v584_v2, %v579_v37  ;;  %v589_v29 = vmul.f32 %v585_v26, %v580_v51  ;;  %v510_v51 = vld [vmem:[#allocation2 + $0x200] sm:$0xff]  ;;  %v512_v26 = vld [vmem:[#allocation2 + $0x210] sm:$0xff] }
  0xdc   : > { %v590_v41 = vadd.f32 %v586_v13, %v571_v23  ;;  %v591_v11 = vadd.f32 %v587_v14, %v572_v24  ;;  %v592_v39 = vadd.f32 %v588_v28, %v573_v34  ;;  %v593_v42 = vadd.f32 %v589_v29, %v574_v35  ;;  %v642_v23 = vld [vmem:[#allocation2 + $0x2f8] sm:$0xff]  ;;  %v658_v29 = vld [vmem:[#allocation2 + $0x300] sm:$0xff] }
  0xdd   : > { %v482_v13 = vadd.f32 %v478_v62, %v1197_v12  ;;  %v483_v14 = vadd.f32 %v479_v52, %v1199_v40  ;;  %v529_v34 = vld [vmem:[#allocation2 + $0x220] sm:$0xff] }
  0xdf   : > { %v501_v40 = vadd.f32 %v497_v33, %v482_v13  ;;  %v502_v52 = vadd.f32 %v498_v18, %v483_v14 }
  0xe0   : > { %v1171_v0 = vpop.permute.xlu1 %613  ;;  %v1173_v1 = vpop.permute.xlu0 %596 }
  0xe1   : > { %v598_v10 = vsel %vm258_vm0, %v1139_v58, %v1173_v1  ;;  %v599_v21 = vsel %vm258_vm0, %v1173_v1, %v1139_v58  ;;  %v617_v57 = vsel %vm278_vm3, %v1171_v0, %v1145_v3  ;;  %v618_v58 = vsel %vm278_vm3, %v1145_v3, %v1171_v0  ;;  %v622_v1 = vld [vmem:[#allocation2 + $0x2d0] sm:$0xff]  ;;  %v511_v3 = vld [vmem:[#allocation2 + $0x208] sm:$0xff]  ;;  %v1255_v62 = vpop.permute.xlu2 %670 }
  0xe2   : > { %v605_v31 = vmul.f32 %v601_v54, %v598_v10  ;;  %v606_v36 = vmul.f32 %v602_v16, %v599_v21  ;;  %v607_v8 = vmul.f32 %v603_v20, %v598_v10  ;;  %v608_v38 = vmul.f32 %v604_v19, %v599_v21  ;;  %v513_v54 = vld [vmem:[#allocation2 + $0x218] sm:$0xff]  ;;  %v639_v19 = vld [vmem:[#allocation2 + $0x2e0] sm:$0xff]  ;;  %v640_v10 = vld [vmem:[#allocation2 + $0x2e8] sm:$0xff] }
  0xe3   : > { %v624_v43 = vmul.f32 %v620_v7, %v617_v57  ;;  %v625_v59 = vmul.f32 %v621_v53, %v618_v58  ;;  %v626_v46 = vmul.f32 %v622_v1, %v617_v57  ;;  %v627_v37 = vmul.f32 %v623_v30, %v618_v58  ;;  %v641_v21 = vld [vmem:[#allocation2 + $0x2f0] sm:$0xff]  ;;  %v530_v58 = vld [vmem:[#allocation2 + $0x228] sm:$0xff] }
  0xe4   : > { %v609_v56 = vadd.f32 %v605_v31, %v590_v41  ;;  %v610_v60 = vadd.f32 %v606_v36, %v591_v11  ;;  %v611_v63 = vadd.f32 %v607_v8, %v592_v39  ;;  %v612_v2 = vadd.f32 %v608_v38, %v593_v42  ;;  %v659_v1 = vld [vmem:[#allocation2 + $0x308] sm:$0xff]  ;;  %v660_v30 = vld [vmem:[#allocation2 + $0x310] sm:$0xff]  ;;  %v661_v31 = vld [vmem:[#allocation2 + $0x318] sm:$0xff] }
  0xe5   : > { %v499_v16 = vadd.f32 %v495_v9, %v480_v5  ;;  %v500_v20 = vadd.f32 %v496_v17, %v481_v6 }
  0xe6   : > { %v628_v9 = vadd.f32 %v624_v43, %v609_v56  ;;  %v629_v17 = vadd.f32 %v625_v59, %v610_v60  ;;  %v630_v27 = vadd.f32 %v626_v46, %v611_v63  ;;  %v631_v28 = vadd.f32 %v627_v37, %v612_v2 }
  0xe8   : > { %v1217_v55 = vpop.permute.xlu1 %634  ;;  %v1219_v61 = vpop.permute.xlu0 %632 }
  0xe9   : > { %v637_v24 = vsel %vm298_vm5, %v1217_v55, %v1219_v61 }
  0xea   : > { %v644_v7 = vmul.f32 %v640_v10, %v637_v24  ;;  %v646_v57 = vmul.f32 %v642_v23, %v637_v24  ;;  %v678_v10 = vld [vmem:[#allocation2 + $0x328] sm:$0xff]  ;;  %v679_v23 = vld [vmem:[#allocation2 + $0x330] sm:$0xff]  ;;  %v696_v24 = vld [vmem:[#allocation2 + $0x340] sm:$0xff] }
  0xec   : > { %v648_v2 = vadd.f32 %v644_v7, %v629_v17 }
  0xf0   : > { %v652_v4 = vpop.permute.xlu1 %651  ;;  %v506_v45 = vpop.permute.xlu0 %505 }
  0xf1   : > { %v507_v0 = vsel %vm338_vm6, %v1175_v22, %v506_v45  ;;  %v508_v44 = vsel %vm338_vm6, %v506_v45, %v1175_v22  ;;  %v636_v22 = vsel %vm298_vm5, %v1219_v61, %v1217_v55  ;;  %v531_v55 = vld [vmem:[#allocation2 + $0x230] sm:$0xff]  ;;  %v532_v61 = vld [vmem:[#allocation2 + $0x238] sm:$0xff]  ;;  %v655_v36 = vsel %vm318_vm4, %v652_v4, %v1229_v32 }
  0xf2   : > { %v514_v25 = vmul.f32 %v510_v51, %v507_v0  ;;  %v515_v12 = vmul.f32 %v511_v3, %v508_v44  ;;  %v516_v5 = vmul.f32 %v512_v26, %v507_v0  ;;  %v517_v6 = vmul.f32 %v513_v54, %v508_v44 }
  0xf3   : > { %v643_v35 = vmul.f32 %v639_v19, %v636_v22  ;;  %v645_v53 = vmul.f32 %v641_v21, %v636_v22  ;;  %v656_v8 = vsel %vm318_vm4, %v1229_v32, %v652_v4  ;;  %v662_v51 = vmul.f32 %v658_v29, %v655_v36  ;;  %v677_v19 = vld [vmem:[#allocation2 + $0x320] sm:$0xff]  ;;  %v692_v21 = vpop.permute.xlu2 %691  ;;  %v680_v22 = vld [vmem:[#allocation2 + $0x338] sm:$0xff] }
  0xf4   : > { %v518_v38 = vadd.f32 %v514_v25, %v499_v16  ;;  %v519_v33 = vadd.f32 %v515_v12, %v500_v20  ;;  %v520_v11 = vadd.f32 %v516_v5, %v501_v40  ;;  %v521_v39 = vadd.f32 %v517_v6, %v502_v52  ;;  %v697_v6 = vld [vmem:[#allocation2 + $0x348] sm:$0xff] }
  0xf5   : > { %v663_v3 = vmul.f32 %v659_v1, %v656_v8  ;;  %v664_v0 = vmul.f32 %v660_v30, %v655_v36  ;;  %v665_v32 = vmul.f32 %v661_v31, %v656_v8  ;;  %v647_v63 = vadd.f32 %v643_v35, %v628_v9  ;;  %v698_v9 = vld [vmem:[#allocation2 + $0x350] sm:$0xff] }
  0xf6   : > { %v649_v26 = vadd.f32 %v645_v53, %v630_v27  ;;  %v650_v54 = vadd.f32 %v646_v57, %v631_v28 }
  0xf7   : > { %v666_v25 = vadd.f32 %v662_v51, %v647_v63  ;;  %v667_v12 = vadd.f32 %v663_v3, %v648_v2 }
  0xf8   : > { %v525_v18 = vpop.permute.xlu1 %524  ;;  %v523_v41 = vpop.permute.xlu0 %522  ;;  %v668_v40 = vadd.f32 %v664_v0, %v649_v26  ;;  %v669_v52 = vadd.f32 %v665_v32, %v650_v54 }
  0xf9   : > { %v526_v42 = vsel %vm358_vm7, %v523_v41, %v525_v18  ;;  %v527_v43 = vsel %vm358_vm7, %v525_v18, %v523_v41 }
  0xfa   : > { %v533_v59 = vmul.f32 %v529_v34, %v526_v42  ;;  %v534_v45 = vmul.f32 %v530_v58, %v527_v43  ;;  %v535_v46 = vmul.f32 %v531_v55, %v526_v42  ;;  %v536_v37 = vmul.f32 %v532_v61, %v527_v43 }
  0xfc   : > { %v537_v4 = vadd.f32 %v533_v59, %v518_v38  ;;  %v538_v44 = vadd.f32 %v534_v45, %v519_v33  ;;  %v539_v56 = vadd.f32 %v535_v46, %v520_v11  ;;  %v540_v60 = vadd.f32 %v536_v37, %v521_v39 }
  0xfe   : > { %v708_v13 = vadd.f32 %v537_v4, %v1123_v47  ;;  %v709_v14 = vadd.f32 %v538_v44, %v1125_v48  ;;  %v710_v16 = vadd.f32 %v539_v56, %v1127_v49  ;;  %v711_v20 = vadd.f32 %v540_v60, %v1129_v50  ;;  %v699_v47 = vld [vmem:[#allocation2 + $0x358] sm:$0xff] }
 0x100   : > { %v673_v5 = vpop.permute.xlu0 %672  ;;  %v690_v17 = vpop.permute.xlu1 %689 }
 0x101   : > { %v674_v48 = vsel %vm338_vm6, %v1255_v62, %v673_v5  ;;  %v675_v49 = vsel %vm338_vm6, %v673_v5, %v1255_v62  ;;  %v693_v50 = vsel %vm358_vm7, %v690_v17, %v692_v21  ;;  %v694_v27 = vsel %vm358_vm7, %v692_v21, %v690_v17 }
 0x102   : > { %v681_v28 = vmul.f32 %v677_v19, %v674_v48  ;;  %v682_v29 = vmul.f32 %v678_v10, %v675_v49  ;;  %v683_v34 = vmul.f32 %v679_v23, %v674_v48  ;;  %v684_v35 = vmul.f32 %v680_v22, %v675_v49 }
 0x103   : > { %v700_v7 = vmul.f32 %v696_v24, %v693_v50  ;;  %v701_v53 = vmul.f32 %v697_v6, %v694_v27  ;;  %v702_v57 = vmul.f32 %v698_v9, %v693_v50  ;;  %v703_v58 = vmul.f32 %v699_v47, %v694_v27 }
 0x104   : > { %v685_v55 = vadd.f32 %v681_v28, %v666_v25  ;;  %v686_v61 = vadd.f32 %v682_v29, %v667_v12  ;;  %v687_v1 = vadd.f32 %v683_v34, %v668_v40  ;;  %v688_v30 = vadd.f32 %v684_v35, %v669_v52 }
 0x106   : > { %v704_v62 = vadd.f32 %v700_v7, %v685_v55  ;;  %v705_v31 = vadd.f32 %v701_v53, %v686_v61  ;;  %v706_v36 = vadd.f32 %v702_v57, %v687_v1  ;;  %v707_v8 = vadd.f32 %v703_v58, %v688_v30 }
 0x108   : > { %v712_v38 = vadd.f32 %v708_v13, %v704_v62  ;;  %v713_v15 = vadd.f32 %v709_v14, %v705_v31  ;;  %v714_v33 = vadd.f32 %v710_v16, %v706_v36  ;;  %v715_v18 = vadd.f32 %v711_v20, %v707_v8 }
 0x10a   : > { %v716_v41 = vmax.f32 %v712_v38, 0.0  ;;  %v717_v11 = vmax.f32 %v713_v15, 0.0  ;;  %v718_v39 = vmax.f32 %v714_v33, 0.0  ;;  %v719_v42 = vmax.f32 %v715_v18, 0.0 }
 0x10c   : > { %720 = vst [vmem:[%s187_s19] sm:$0xff] %v716_v41 }
 0x10d   : > { %721 = vst [vmem:[%s187_s19 + $0x8] sm:$0xff] %v717_v11 }
 0x10e   : > { %722 = vst [vmem:[%s187_s19 + $0x10] sm:$0xff] %v718_v39 }
 0x10f   : > { %723 = vst [vmem:[%s187_s19 + $0x18] sm:$0xff] %v719_v42 }
 0x110 PF: > { %s14_s12 = sadd.s32 1, %s875_s12  }
 0x111   : > { %p11_p7 = scmp.ge.s32.totalorder %s14_s12, 4  }
 0x113   :  { %13 = sbr.rel (!%p11_p7) target bundleno = 1 (0x1), region = 93 }
 0x118   :  { %745 = vsyncpa [#allocation3], 1 }
 0x119   :  { %747 = vsyncpa [#allocation3 + $0x1], 1 }

</bundles_post_ra>
